<compile_context>
chip_gen: v5e
topology: v5e:2x2
jax: 0.10.0
libtpu: 0.0.40
codegen_flags: <defaults>
</compile_context>

<pallas_src>
import functools

import jax
import jax.numpy as jnp
from jax.experimental import pallas as pl
from jax.experimental.pallas import tpu as pltpu


def _round_up(x, m):
    return (x + m - 1) // m * m


def _fused_kernel(x_ref, bias_ref, w1s_ref, b1s_ref, w2s_ref, b2s_ref, o_ref, *,
                  block_num, dot_dtype):
    """temp = x + bias ; then block_num x residual MLP blocks, all in VMEM."""
    t = x_ref[...].astype(jnp.float32) + bias_ref[...].astype(jnp.float32)  # (tn, D)
    for blk in range(block_num):                       # static unroll (small)
        h = jnp.maximum(t, 0.0)                        # nn.ReLU (f32 VPU)
        # nn.Dropout(p=0.2) -> identity in eval mode
        h = jnp.dot(h.astype(dot_dtype), w1s_ref[blk],
                    preferred_element_type=jnp.float32) + b1s_ref[blk]
        h = jnp.maximum(h, 0.0)                        # nn.ReLU
        y = jnp.dot(h.astype(dot_dtype), w2s_ref[blk],
                    preferred_element_type=jnp.float32) + b2s_ref[blk]
        t = t + y                                      # residual (f32)
    o_ref[...] = t.astype(o_ref.dtype)


def _choose_tn(N):
    # Large row tiles to keep the MXU fed; small N falls back to one padded
    # tile per batch element (the batch grid axis still gives parallelism).
    if N >= 512:
        return 256
    if N >= 128:
        return 128
    return _round_up(max(N, 8), 8)


def fused_forward(x, bias, w1s, b1s, w2s, b2s):
    """x: (B, N, D) activations; bias: (B, D) conditioning (c_remap(c)+pe(t))."""
    B, N, D = x.shape
    block_num, _, H = w1s.shape

    tn = _choose_tn(N)
    Np = _round_up(N, tn)
    if Np != N:
        x = jnp.pad(x, ((0, 0), (0, Np - N), (0, 0)))
    bias3 = bias[:, None, :]                           # (B, 1, D)

    grid = (B, Np // tn)
    kernel = functools.partial(_fused_kernel,
                               block_num=block_num, dot_dtype=w1s.dtype)

    # Weights are tiny here (block_num * 2 * D * H bf16 ~= 128 KiB) and stay
    # fully VMEM-resident across the whole grid.
    # TODO(synk): at production widths (dim/hidden >= ~2-4K) tile the hidden
    # dim with an "arbitrary" grid axis + f32 accumulator and double-buffer the
    # per-block weights with pltpu.make_async_copy so they fit v7x's 64 MiB VMEM.
    out = pl.pallas_call(
        kernel,
        out_shape=jax.ShapeDtypeStruct((B, Np, D), x.dtype),
        grid_spec=pltpu.PrefetchScalarGridSpec(
            num_scalar_prefetch=0,
            grid=grid,
            in_specs=[
                pl.BlockSpec((None, tn, D), lambda b, i: (b, i, 0)),   # x tile (tn, D)
                pl.BlockSpec((None, 1, D), lambda b, i: (b, 0, 0)),    # per-batch bias (1, D)
                pl.BlockSpec((block_num, D, H), lambda b, i: (0, 0, 0)),
                pl.BlockSpec((block_num, 1, H), lambda b, i: (0, 0, 0)),
                pl.BlockSpec((block_num, H, D), lambda b, i: (0, 0, 0)),
                pl.BlockSpec((block_num, 1, D), lambda b, i: (0, 0, 0)),
            ],
            out_specs=pl.BlockSpec((None, tn, D), lambda b, i: (b, i, 0)),
        ),
        compiler_params=pltpu.CompilerParams(
            dimension_semantics=("parallel", "parallel"),
            vmem_limit_bytes=32 * 1024 * 1024,  # safe on v5e/v6e (128 MiB) and v7x (64 MiB)
        ),
    )(x, bias3, w1s, b1s, w2s, b2s)

    return out[:, :N] if Np != N else out


# --------------------------------------------------------------------------
# Parameters / forward
# --------------------------------------------------------------------------

def init_params(key, dim, c_dim, n_steps, hidden_dim, block_num):
    keys = jax.random.split(key, 4 * block_num + 5)
    ki = iter(range(len(keys)))

    def linear(kw, kb, fan_in, fan_out):
        # Roughly PyTorch's uniform(-1/sqrt(fan_in), 1/sqrt(fan_in)) init.
        bound = 1.0 / jnp.sqrt(fan_in)
        w = jax.random.uniform(kw, (fan_in, fan_out), jnp.float32, -bound, bound)
        b = jax.random.uniform(kb, (fan_out,), jnp.float32, -bound, bound)
        return w, b

    w1_list, b1_list, w2_list, b2_list = [], [], [], []
    for _ in range(block_num):
        w1, b1 = linear(keys[next(ki)], keys[next(ki)], dim, hidden_dim)
        w2, b2 = linear(keys[next(ki)], keys[next(ki)], hidden_dim, dim)
        w1_list.append(w1); b1_list.append(b1)
        w2_list.append(w2); b2_list.append(b2)

    c_w1, c_b1 = linear(keys[next(ki)], keys[next(ki)], c_dim, hidden_dim)
    c_w2, c_b2 = linear(keys[next(ki)], keys[next(ki)], hidden_dim, dim)

    # PositionalEncoding: xavier-normal initialized embedding (n_steps, dim)
    std = jnp.sqrt(2.0 / (n_steps + dim))
    pe = jax.random.normal(keys[next(ki)], (n_steps, dim), jnp.float32) * std

    return {
        # Stacked block weights: bf16 for MXU peak + halved DMA, biases f32.
        "w1s": jnp.stack(w1_list).astype(jnp.bfloat16),          # (Bk, dim, hid)
        "b1s": jnp.stack(b1_list)[:, None, :],                    # (Bk, 1, hid) f32
        "w2s": jnp.stack(w2_list).astype(jnp.bfloat16),          # (Bk, hid, dim)
        "b2s": jnp.stack(b2_list)[:, None, :],                    # (Bk, 1, dim) f32
        "c_w1": c_w1, "c_b1": c_b1, "c_w2": c_w2, "c_b2": c_b2,   # tiny c-path, f32
        "pe": pe,
    }


def _c_remap(params, c):
    # Tiny (B, c_dim) path — plain JAX/XLA; a kernel launch costs more than the math.
    h = jnp.maximum(c, 0.0) @ params["c_w1"] + params["c_b1"]
    return jnp.maximum(h, 0.0) @ params["c_w2"] + params["c_b2"]


def mlp_forward(params, x, c, t):
    c_path = _c_remap(params, c)                              # (B, dim)
    pe = jnp.take(params["pe"], t, axis=0)                    # (B, dim) gather (glue)
    bias = c_path + pe                                        # (B, dim), tiny
    # Conditioning add + all residual blocks fused in one pallas_call.
    return fused_forward(x, bias, params["w1s"], params["b1s"],
                         params["w2s"], params["b2s"])


def mlp_forward_ref(params, x, c, t):
    """Pure-JAX reference mirroring the kernel's bf16-operand / f32-accum math."""
    c_path = _c_remap(params, c)
    pe = jnp.take(params["pe"], t, axis=0)
    temp = x + (c_path + pe)[:, None, :]

    block_num = params["w1s"].shape[0]
    for blk in range(block_num):
        w1 = params["w1s"][blk]; b1 = params["b1s"][blk]
        w2 = params["w2s"][blk]; b2 = params["b2s"][blk]
        h = jnp.dot(jnp.maximum(temp, 0.0).astype(w1.dtype), w1,
                    preferred_element_type=jnp.float32) + b1
        y = jnp.dot(jnp.maximum(h, 0.0).astype(w2.dtype), w2,
                    preferred_element_type=jnp.float32) + b2
        temp = temp + y
    return temp


if __name__ == "__main__":
    dim, c_dim, n_steps, hidden_dim, block_num = 128, 64, 100, 128, 2
    B, N = 2, 8

    key = jax.random.PRNGKey(0)
    kp, kx, kc, kt = jax.random.split(key, 4)
    params = init_params(kp, dim, c_dim, n_steps, hidden_dim, block_num)

    x = jax.random.normal(kx, (B, N, dim), jnp.float32)
    c = jax.random.normal(kc, (B, c_dim), jnp.float32)
    t = jax.random.randint(kt, (B,), 0, n_steps)

    out = jax.block_until_ready(mlp_forward(params, x, c, t))
    ref = jax.block_until_ready(mlp_forward_ref(params, x, c, t))

    assert out.shape == (B, N, dim)
    assert jnp.allclose(out, ref, atol=2e-3, rtol=2e-3), (
        f"max abs err = {jnp.max(jnp.abs(out - ref))}")
    print("KERNEL_OK")
</pallas_src>

<mosaic_0001>
module attributes {stable_mosaic.version = 11 : i64} {
  func.func @_fused_kernel(%arg0: i32, %arg1: i32, %arg2: memref<1x8x128xf32, #tpu.memory_space<vmem>>, %arg3: memref<1x1x128xf32, #tpu.memory_space<vmem>>, %arg4: memref<2x128x128xbf16, #tpu.memory_space<vmem>>, %arg5: memref<2x1x128xf32, #tpu.memory_space<vmem>>, %arg6: memref<2x128x128xbf16, #tpu.memory_space<vmem>>, %arg7: memref<2x1x128xf32, #tpu.memory_space<vmem>>, %arg8: memref<1x8x128xf32, #tpu.memory_space<vmem>>) attributes {dimension_semantics = [#tpu.dimension_semantics<parallel>, #tpu.dimension_semantics<parallel>], iteration_bounds = array<i64: 2, 1>, scalar_prefetch = 0 : i64, scratch_operands = 0 : i64, tpu.core_type = #tpu.core_type<tc>, window_params = [{transform_indices = @transform_0, window_bounds = array<i64: 1, 8, 128>}, {transform_indices = @transform_1, window_bounds = array<i64: 1, 1, 128>}, {pipeline_mode = #tpu.pipeline_mode<synchronous>, transform_indices = @transform_2, window_bounds = array<i64: 2, 128, 128>}, {pipeline_mode = #tpu.pipeline_mode<synchronous>, transform_indices = @transform_3, window_bounds = array<i64: 2, 1, 128>}, {pipeline_mode = #tpu.pipeline_mode<synchronous>, transform_indices = @transform_4, window_bounds = array<i64: 2, 128, 128>}, {pipeline_mode = #tpu.pipeline_mode<synchronous>, transform_indices = @transform_5, window_bounds = array<i64: 2, 1, 128>}, {transform_indices = @transform_6, window_bounds = array<i64: 1, 8, 128>}]} {
    %c0 = arith.constant 0 : index
    %c0_0 = arith.constant 0 : index
    %c0_1 = arith.constant 0 : index
    %0 = vector.load %arg2[%c0, %c0_0, %c0_1] : memref<1x8x128xf32, #tpu.memory_space<vmem>>, vector<1x8x128xf32>
    %1 = vector.shape_cast %0 : vector<1x8x128xf32> to vector<8x128xf32>
    %c0_2 = arith.constant 0 : index
    %c0_3 = arith.constant 0 : index
    %c0_4 = arith.constant 0 : index
    %2 = vector.load %arg3[%c0_2, %c0_3, %c0_4] : memref<1x1x128xf32, #tpu.memory_space<vmem>>, vector<1x1x128xf32>
    %3 = vector.shape_cast %2 : vector<1x1x128xf32> to vector<1x128xf32>
    %4 = vector.broadcast %3 : vector<1x128xf32> to vector<8x128xf32>
    %5 = arith.addf %1, %4 : vector<8x128xf32>
    %cst = arith.constant 0.000000e+00 : f32
    %6 = vector.broadcast %cst : f32 to vector<8x128xf32>
    %7 = arith.maximumf %5, %6 : vector<8x128xf32>
    %8 = arith.truncf %7 : vector<8x128xf32> to vector<8x128xbf16>
    %c0_5 = arith.constant 0 : index
    %c0_6 = arith.constant 0 : index
    %c0_7 = arith.constant 0 : index
    %9 = vector.load %arg4[%c0_5, %c0_6, %c0_7] : memref<2x128x128xbf16, #tpu.memory_space<vmem>>, vector<1x128x128xbf16>
    %10 = vector.shape_cast %9 : vector<1x128x128xbf16> to vector<128x128xbf16>
    %cst_8 = arith.constant dense<0.000000e+00> : vector<8x128xf32>
    %11 = tpu.matmul %8, %10, %cst_8 {dimension_numbers = #tpu.dot_dimension_numbers<[1], [0], [0], [1], [0, 0, 1, 1], [], []>} : vector<8x128xbf16>, vector<128x128xbf16>, vector<8x128xf32> -> vector<8x128xf32>
    %c0_9 = arith.constant 0 : index
    %c0_10 = arith.constant 0 : index
    %c0_11 = arith.constant 0 : index
    %12 = vector.load %arg5[%c0_9, %c0_10, %c0_11] : memref<2x1x128xf32, #tpu.memory_space<vmem>>, vector<1x1x128xf32>
    %13 = vector.shape_cast %12 : vector<1x1x128xf32> to vector<1x128xf32>
    %14 = vector.broadcast %13 : vector<1x128xf32> to vector<8x128xf32>
    %15 = arith.addf %11, %14 : vector<8x128xf32>
    %cst_12 = arith.constant 0.000000e+00 : f32
    %16 = vector.broadcast %cst_12 : f32 to vector<8x128xf32>
    %17 = arith.maximumf %15, %16 : vector<8x128xf32>
    %18 = arith.truncf %17 : vector<8x128xf32> to vector<8x128xbf16>
    %c0_13 = arith.constant 0 : index
    %c0_14 = arith.constant 0 : index
    %c0_15 = arith.constant 0 : index
    %19 = vector.load %arg6[%c0_13, %c0_14, %c0_15] : memref<2x128x128xbf16, #tpu.memory_space<vmem>>, vector<1x128x128xbf16>
    %20 = vector.shape_cast %19 : vector<1x128x128xbf16> to vector<128x128xbf16>
    %cst_16 = arith.constant dense<0.000000e+00> : vector<8x128xf32>
    %21 = tpu.matmul %18, %20, %cst_16 {dimension_numbers = #tpu.dot_dimension_numbers<[1], [0], [0], [1], [0, 0, 1, 1], [], []>} : vector<8x128xbf16>, vector<128x128xbf16>, vector<8x128xf32> -> vector<8x128xf32>
    %c0_17 = arith.constant 0 : index
    %c0_18 = arith.constant 0 : index
    %c0_19 = arith.constant 0 : index
    %22 = vector.load %arg7[%c0_17, %c0_18, %c0_19] : memref<2x1x128xf32, #tpu.memory_space<vmem>>, vector<1x1x128xf32>
    %23 = vector.shape_cast %22 : vector<1x1x128xf32> to vector<1x128xf32>
    %24 = vector.broadcast %23 : vector<1x128xf32> to vector<8x128xf32>
    %25 = arith.addf %21, %24 : vector<8x128xf32>
    %26 = arith.addf %5, %25 : vector<8x128xf32>
    %cst_20 = arith.constant 0.000000e+00 : f32
    %27 = vector.broadcast %cst_20 : f32 to vector<8x128xf32>
    %28 = arith.maximumf %26, %27 : vector<8x128xf32>
    %29 = arith.truncf %28 : vector<8x128xf32> to vector<8x128xbf16>
    %c1 = arith.constant 1 : index
    %c0_21 = arith.constant 0 : index
    %c0_22 = arith.constant 0 : index
    %30 = vector.load %arg4[%c1, %c0_21, %c0_22] : memref<2x128x128xbf16, #tpu.memory_space<vmem>>, vector<1x128x128xbf16>
    %31 = vector.shape_cast %30 : vector<1x128x128xbf16> to vector<128x128xbf16>
    %cst_23 = arith.constant dense<0.000000e+00> : vector<8x128xf32>
    %32 = tpu.matmul %29, %31, %cst_23 {dimension_numbers = #tpu.dot_dimension_numbers<[1], [0], [0], [1], [0, 0, 1, 1], [], []>} : vector<8x128xbf16>, vector<128x128xbf16>, vector<8x128xf32> -> vector<8x128xf32>
    %c1_24 = arith.constant 1 : index
    %c0_25 = arith.constant 0 : index
    %c0_26 = arith.constant 0 : index
    %33 = vector.load %arg5[%c1_24, %c0_25, %c0_26] : memref<2x1x128xf32, #tpu.memory_space<vmem>>, vector<1x1x128xf32>
    %34 = vector.shape_cast %33 : vector<1x1x128xf32> to vector<1x128xf32>
    %35 = vector.broadcast %34 : vector<1x128xf32> to vector<8x128xf32>
    %36 = arith.addf %32, %35 : vector<8x128xf32>
    %cst_27 = arith.constant 0.000000e+00 : f32
    %37 = vector.broadcast %cst_27 : f32 to vector<8x128xf32>
    %38 = arith.maximumf %36, %37 : vector<8x128xf32>
    %39 = arith.truncf %38 : vector<8x128xf32> to vector<8x128xbf16>
    %c1_28 = arith.constant 1 : index
    %c0_29 = arith.constant 0 : index
    %c0_30 = arith.constant 0 : index
    %40 = vector.load %arg6[%c1_28, %c0_29, %c0_30] : memref<2x128x128xbf16, #tpu.memory_space<vmem>>, vector<1x128x128xbf16>
    %41 = vector.shape_cast %40 : vector<1x128x128xbf16> to vector<128x128xbf16>
    %cst_31 = arith.constant dense<0.000000e+00> : vector<8x128xf32>
    %42 = tpu.matmul %39, %41, %cst_31 {dimension_numbers = #tpu.dot_dimension_numbers<[1], [0], [0], [1], [0, 0, 1, 1], [], []>} : vector<8x128xbf16>, vector<128x128xbf16>, vector<8x128xf32> -> vector<8x128xf32>
    %c1_32 = arith.constant 1 : index
    %c0_33 = arith.constant 0 : index
    %c0_34 = arith.constant 0 : index
    %43 = vector.load %arg7[%c1_32, %c0_33, %c0_34] : memref<2x1x128xf32, #tpu.memory_space<vmem>>, vector<1x1x128xf32>
    %44 = vector.shape_cast %43 : vector<1x1x128xf32> to vector<1x128xf32>
    %45 = vector.broadcast %44 : vector<1x128xf32> to vector<8x128xf32>
    %46 = arith.addf %42, %45 : vector<8x128xf32>
    %47 = arith.addf %26, %46 : vector<8x128xf32>
    %c0_35 = arith.constant 0 : index
    %c0_36 = arith.constant 0 : index
    %c0_37 = arith.constant 0 : index
    %48 = vector.load %arg8[%c0_35, %c0_36, %c0_37] : memref<1x8x128xf32, #tpu.memory_space<vmem>>, vector<1x8x128xf32>
    %49 = vector.shape_cast %48 : vector<1x8x128xf32> to vector<8x128xf32>
    %50 = vector.shape_cast %47 : vector<8x128xf32> to vector<1x8x128xf32>
    tpu.vector_store %arg8[%c0_35, %c0_36, %c0_37], %50 {strides = array<i32>} : memref<1x8x128xf32, #tpu.memory_space<vmem>>, vector<1x8x128xf32>,
    return
  }
  func.func @transform_0(%arg0: i32, %arg1: i32) -> (i32, i32, i32) {
    %c0_i32 = arith.constant 0 : i32
    %c0_i32_0 = arith.constant 0 : i32
    return %arg0, %arg1, %c0_i32 : i32, i32, i32
  }
  func.func @transform_1(%arg0: i32, %arg1: i32) -> (i32, i32, i32) {
    %c0_i32 = arith.constant 0 : i32
    %c0_i32_0 = arith.constant 0 : i32
    %c0_i32_1 = arith.constant 0 : i32
    return %arg0, %c0_i32, %c0_i32_0 : i32, i32, i32
  }
  func.func @transform_2(%arg0: i32, %arg1: i32) -> (i32, i32, i32) {
    %c0_i32 = arith.constant 0 : i32
    %c0_i32_0 = arith.constant 0 : i32
    %c0_i32_1 = arith.constant 0 : i32
    %c0_i32_2 = arith.constant 0 : i32
    return %c0_i32, %c0_i32_0, %c0_i32_1 : i32, i32, i32
  }
  func.func @transform_3(%arg0: i32, %arg1: i32) -> (i32, i32, i32) {
    %c0_i32 = arith.constant 0 : i32
    %c0_i32_0 = arith.constant 0 : i32
    %c0_i32_1 = arith.constant 0 : i32
    %c0_i32_2 = arith.constant 0 : i32
    return %c0_i32, %c0_i32_0, %c0_i32_1 : i32, i32, i32
  }
  func.func @transform_4(%arg0: i32, %arg1: i32) -> (i32, i32, i32) {
    %c0_i32 = arith.constant 0 : i32
    %c0_i32_0 = arith.constant 0 : i32
    %c0_i32_1 = arith.constant 0 : i32
    %c0_i32_2 = arith.constant 0 : i32
    return %c0_i32, %c0_i32_0, %c0_i32_1 : i32, i32, i32
  }
  func.func @transform_5(%arg0: i32, %arg1: i32) -> (i32, i32, i32) {
    %c0_i32 = arith.constant 0 : i32
    %c0_i32_0 = arith.constant 0 : i32
    %c0_i32_1 = arith.constant 0 : i32
    %c0_i32_2 = arith.constant 0 : i32
    return %c0_i32, %c0_i32_0, %c0_i32_1 : i32, i32, i32
  }
  func.func @transform_6(%arg0: i32, %arg1: i32) -> (i32, i32, i32) {
    %c0_i32 = arith.constant 0 : i32
    %c0_i32_0 = arith.constant 0 : i32
    return %arg0, %arg1, %c0_i32 : i32, i32, i32
  }
}

</mosaic_0001>

<bundles_post_ra>
// kernel: tpu_custom_call.1
= control target key start
LH: loop header
LB: loop body
LE: loop exit
PB: predicated region body
PF: predicated region fallthrough
CT: control target
= control target key end

     0   :  { %s1543_s0 = inlined_call_operand.hbm [shape: f32[2,8,128], index: 0, kind: input, shape index: {}]   ;;  %s1544_s1 = inlined_call_operand.hbm [shape: f32[2,1,128], index: 1, kind: input, shape index: {}]   ;;  %s1545_s2 = inlined_call_operand.hbm [shape: bf16[2,128,128], index: 2, kind: input, shape index: {}]   ;;  %s1546_s3 = inlined_call_operand.vmem [shape: f32[2,1,128], index: 3, kind: input, shape index: {}]   ;;  %s1547_s4 = inlined_call_operand.hbm [shape: bf16[2,128,128], index: 4, kind: input, shape index: {}]   ;;  %s1548_s5 = inlined_call_operand.vmem [shape: f32[2,1,128], index: 5, kind: input, shape index: {}]   ;;  %s1549_s6 = inlined_call_operand.hbm [shape: f32[2,8,128], index: 6, kind: output, shape index: {}]  }
   0x1   :  { %1554 = sst [smem:[#allocation21_spill]] %s1545_s2 }
   0x2   :  { %1555 = sst [smem:[#allocation22_spill]] %s1547_s4 }
   0x3   :  { %11 = vsyncpa [#allocation3], 0 }
   0x4   :  { %13 = vsyncpa [#allocation3 + $0x1], 0 }
   0x5   :  { %14 = vsyncpa [#allocation6], 0 }
   0x6   :  { %16 = vsyncpa [#allocation6 + $0x1], 0 }
   0x7   :  { %17 = vsyncpa [#allocation9], 0 }
   0x8   :  { %18 = vsyncpa [#allocation4], 0 }
   0x9   :  { %20 = vsyncpa [#allocation4 + $0x1], 0  ;;  %s1363_s21 = smov 0   ;;  %s1365_s22 = smov 0  }
   0xa   :  { %s1367_s23 = smov 0   ;;  %s1369_s24 = smov 0  }
   0xb   :  { %s1371_s25 = smov 0   ;;  %s1373_s26 = smov 0  }
   0xc LB: > { %1556 = sst [smem:[#allocation16_spill]] %s1302_s21  ;;  %s1394_s27 = sadd.s32 4294967295, %s1322_s26   ;;  %s1322_s26 = sphi %s1373_s26, %s26_s26   ;;  %s1318_s25 = sphi %s1371_s25, %s1576_s25   ;;  %s1314_s24 = sphi %s1369_s24, %s1575_s24   ;;  %s1310_s23 = sphi %s1367_s23, %s1571_s23   ;;  %s1306_s22 = sphi %s1365_s22, %s1574_s22   ;;  %s1302_s21 = sphi %s1363_s21, %s1573_s21  }
   0xd   : > { %1557 = sst [smem:[#allocation17_spill]] %s1310_s23  ;;  %p836_p0 = scmp.ge.s32.totalorder %s1322_s26, 1 }
   0xe   : > { %p61_p1 = scmp.eq.s32.totalorder %s1394_s27, 0  ;;  %p209_p2 = scmp.lt.s32.totalorder %s1322_s26, 3 }
   0xf   : > { %s1558_s2 = sld [smem:[#allocation21_spill]]  ;;  %s1324_s8 = smov [#allocation7]  }
  0x10   : > { %p1402_p3 = pnand %p836_p0, %p209_p2  ;;  %s222_s9 = sshll.u32 %s1324_s8, 4  ;;  %s223_s9 = int_to_ptr.vmem [resolvable:$true] %s222_s9 }
  0x11   : > { %p839_p6 = scmp.ge.s32.totalorder %s1322_s26, 2  ;;  %s1560_s4 = sld [smem:[#allocation22_spill]] }
  0x12   : > { %p1027_p4 = pneg %p1402_p3  ;;  %s1325_s13 = smov 64  }
  0x13   : > { %s1326_s14 = smov 4   ;;  %s1327_s15 = smov [#allocation8]  }
  0x14   : > { %p1028_p5 = pnand %p1027_p4, %p61_p1  ;;  %s239_s16 = sshll.u32 %s1327_s15, 4  ;;  %s240_s16 = int_to_ptr.vmem [resolvable:$true] %s239_s16 }
  0x15   : > { %s220_s30 = sshll.u32 %s1558_s2, 4  ;;  %s835_s17 = sadd.s32 4294967294, %s1322_s26   ;;  %s221_s30 = int_to_ptr.hbm [resolvable:$true] %s220_s30 }
  0x16   : > { %1030 = dma.hbm_to_vmem [thread:$0]  (!%p1028_p5), %s221_s30, 2048, %s223_s9, [#allocation6], %s1325_s13, %s1325_s13, %s1326_s14  }
  0x17   : > { %s237_s12 = sshll.u32 %s1560_s4, 4  ;;  %s38_s18 = sadd.s32 1, %s1318_s25  ;;  %s238_s12 = int_to_ptr.hbm [resolvable:$true] %s237_s12 }
  0x18   : > { %1033 = dma.hbm_to_vmem [thread:$0]  (!%p1028_p5), %s238_s12, 2048, %s240_s16, [#allocation9], %s1325_s13, %s1325_s13, %s1326_s14  }
  0x19   : > { %p40_p7 = scmp.ge.s32.totalorder %s38_s18, 2  ;;  %s47_s19 = sadd.s32 1, %s1310_s23 }
  0x1a   : > { %p54_p8 = scmp.ne.s32.totalorder %s1310_s23, %s1306_s22  ;;  %p55_p9 = scmp.eq.s32.totalorder %s1322_s26, 0 }
  0x1b   : > { %s1578_s18 = smov (%p40_p7, %s38_s18), 0  ;;  %p60_p11 = scmp.ne.s32.totalorder %s1306_s22, %s1302_s21 }
  0x1c   : > { %1561 = sst [smem:[#allocation18_spill]] %s1578_s18  ;;  %p1422_p10 = por %p55_p9, %p54_p8 }
  0x1d   : > { %s42_s28 = ssub.s32 %s1318_s25, %s1578_s18  ;;  %p196_p12 = scmp.eq.s32.totalorder %s1394_s27, 1 }
  0x1e   : > { %p45_p13 = scmp.eq.s32.totalorder %s42_s28, 0  ;;  %p1433_p0 = por %p61_p1, %p60_p11 }
  0x1f   : > { %p1437_p2 = por %p196_p12, %p54_p8  ;;  %p202_p4 = scmp.eq.s32.totalorder %s835_s17, 1 }
  0x20   : > { %s1442_s8 = scalar_select %p45_p13, %s1310_s23, %s47_s19  }
  0x21   : > { %p1444_p5 = por %p202_p4, %p60_p11  ;;  %p1047_p7 = scmp.lt.s32.totalorder %s1322_s26, 2 }
  0x22   : > { %1565 = sst [smem:[#allocation19_spill]] %s1442_s8  ;;  %s256_s10 = sand.u32 1, %s1310_s23  }
  0x23   : > { %s1566_s9 = scalar_select %p1444_p5, 1, 0 }
  0x24   : > { %s841_s11 = sshll.u32 %s1318_s25, 3  ;;  %s840_s12 = sshll.u32 %s256_s10, 3 }
  0x25   : > { %1567 = sst [smem:[#allocation20_spill]] %s1566_s9  ;;  %s265_s15 = scalar_lea.hbm %s1543_s0, %s841_s11 }
  0x26   : > { %s267_s16 = sshll.u32 %s265_s15, 4  ;;  %s260_s28 = scalar_lea.vmem [#allocation2], %s840_s12  ;;  %s268_s16 = int_to_ptr.hbm [resolvable:$true] %s267_s16 }
  0x27   : > { %s269_s2 = sshll.u32 %s260_s28, 4  ;;  %p1035_p8 = pnand %p1047_p7, %p1422_p10  ;;  %s270_s2 = int_to_ptr.vmem [resolvable:$true] %s269_s2 }
  0x28   : > { %s276_s17 = sand.u32 1, %s1322_s26   ;;  %s282_s18 = scalar_lea.hbm %s1544_s1, %s1318_s25 }
  0x29   : > { %s257_s8 = scalar_lea.sflag [#allocation3], %s256_s10  ;;  %s284_s23 = sshll.u32 %s282_s18, 4  ;;  %s285_s23 = int_to_ptr.hbm [resolvable:$true] %s284_s23 }
  0x2a   : > { %1037 = dma.hbm_to_vmem [thread:$0]  (!%p1035_p8), %s268_s16, 128, %s270_s2, %s257_s8  }
  0x2b   : > { %s279_s9 = scalar_lea.vmem [#allocation5], %s256_s10  ;;  %s277_s11 = scalar_lea.sflag [#allocation6], %s276_s17 }
  0x2c   : > { %s286_s21 = sshll.u32 %s279_s9, 4  ;;  %295 = sbr.rel (%p1402_p3) target bundleno = 633 (0x279), region = 44  ;;  %s287_s21 = int_to_ptr.vmem [resolvable:$true] %s286_s21 }
  0x2d   : > { %1040 = dma.hbm_to_vmem [thread:$0]  (!%p1035_p8), %s285_s23, 16, %s287_s21, %s277_s11  }
  0x2e   : > { %s1464_s20 = sand.u32 (!%p1402_p3), 1, %s1306_s22  }
  0x2f   : > { %s843_s4 = sshll.u32 (!%p1402_p3), %s1464_s20, 3  ;;  %s298_s12 = scalar_lea.sflag (!%p1402_p3), [#allocation3], %s1464_s20 }
  0x30   : > { %s1470_s2 = scalar_lea.vmem (!%p1402_p3), [#allocation2], %s843_s4 }
  0x31   : > { %1281 = dma.done.wait (%p1433_p0), %s298_s12, 128  }
  0x32   : > { %1283 = vsyncadd (%p1433_p0), %s298_s12, 4294967168  ;;  %s307_s21 = sand.u32 1, %s1394_s27   ;;  %s310_s7 = scalar_lea.vmem [#allocation5], %s1464_s20 }
  0x33   : > { %s308_s23 = scalar_lea.sflag [#allocation6], %s307_s21 }
  0x34   : > { %1285 = dma.done.wait (%p1433_p0), %s308_s23, 16  }
  0x35   : > { %1287 = vsyncadd (%p1433_p0), %s308_s23, 4294967280 }
  0x36   : > { %1289 = dma.done.wait (%p61_p1), [#allocation6], 2048  }
  0x37   : > { %1291 = vsyncadd (%p61_p1), [#allocation6], 4294965248 }
  0x38   : > { %1293 = dma.done.wait (%p61_p1), [#allocation9], 2048  }
  0x39   : > { %1295 = vsyncadd (%p61_p1), [#allocation9], 4294965248  ;;  %v988_v0 = vld [vmem:[#allocation7 + $0x38] sm:$0xff]  ;;  %v987_v1 = vld [vmem:[#allocation7 + $0x30] sm:$0xff]  ;;  %s978_s13 = sshll.u32 %s1314_s24, 3  ;;  %s353_s19 = scalar_lea.vmem [#allocation10], %s843_s4 }
  0x3a   : > { %430 = vmatpush.bf16.msra.mxu0 %v988_v0  ;;  %v996_v2 = vld [vmem:[#allocation8 + $0x38] sm:$0xff]  ;;  %v995_v3 = vld [vmem:[#allocation8 + $0x30] sm:$0xff]  ;;  %v986_v4 = vld [vmem:[#allocation7 + $0x28] sm:$0xff]  ;;  %s711_s17 = scalar_lea.hbm %s1549_s6, %s978_s13  ;;  %s713_s11 = sshll.u32 %s353_s19, 4  ;;  %s714_s11 = int_to_ptr.vmem [resolvable:$true] %s713_s11 }
  0x3b   : > { %513 = vmatpush.bf16.msra.mxu1 %v996_v2  ;;  %v994_v5 = vld [vmem:[#allocation8 + $0x28] sm:$0xff]  ;;  %v985_v6 = vld [vmem:[#allocation7 + $0x20] sm:$0xff]  ;;  %v984_v8 = vld [vmem:[#allocation7 + $0x18] sm:$0xff]  ;;  %s715_s12 = sshll.u32 %s711_s17, 4  ;;  %s700_s24 = scalar_lea.sflag [#allocation4], %s1464_s20  ;;  %s716_s12 = int_to_ptr.hbm [resolvable:$true] %s715_s12 }
  0x3c   : > { %v993_v7 = vld [vmem:[#allocation8 + $0x20] sm:$0xff]  ;;  %v1103_v9 = vld [vmem:[%s310_s7] ss:$0 sm:$0xff]  ;;  %v992_v10 = vld [vmem:[#allocation8 + $0x18] sm:$0xff]  ;;  %s1248_s27 = scalar_lea.hbm %s1549_s6, 16 }
  0x3d   : > { %v983_v11 = vld [vmem:[#allocation7 + $0x10] sm:$0xff]  ;;  %v982_v15 = vld [vmem:[#allocation7 + $0x8] sm:$0xff]  ;;  %v981_v17 = vld [vmem:[#allocation7] sm:$0xff] }
  0x3e   : > { %431 = vmatpush.bf16.msra.mxu0 %v987_v1  ;;  %v354_v12 = vld [vmem:[%s1470_s2] sm:$0xff]  ;;  %v989_v20 = vld [vmem:[#allocation8] sm:$0xff]  ;;  %s1242_s2 = sshra.s32 %s716_s12, 4  ;;  %s1243_s2 = int_to_ptr.hbm [resolvable:$true] %s1242_s2 }
  0x3f   : > { %514 = vmatpush.bf16.msra.mxu1 %v995_v3  ;;  %v359_v13 = vadd.f32 %v1103_v9, %v354_v12  ;;  %v991_v14 = vld [vmem:[#allocation8 + $0x10] sm:$0xff]  ;;  %v990_v19 = vld [vmem:[#allocation8 + $0x8] sm:$0xff]  ;;  %v1004_v21 = vld [vmem:[#allocation7 + $0x78] sm:$0xff]  ;;  %s1244_s21 = scalar_lea.hbm %s1243_s2, 8  ;;  %p1249_p10 = scmp.lt.s32.totalorder %s1243_s2, %s1549_s6 }
  0x40   : > { %599 = vmatpush.bf16.msra.mxu2 %v1004_v21  ;;  %v1003_v22 = vld [vmem:[#allocation7 + $0x70] sm:$0xff]  ;;  %v1002_v23 = vld [vmem:[#allocation7 + $0x68] sm:$0xff]  ;;  %v1001_v24 = vld [vmem:[#allocation7 + $0x60] sm:$0xff]  ;;  %p1245_p1 = scmp.ne.s32.totalorder %s1243_s2, %s1244_s21  ;;  %p1250_p11 = scmp.lt.s32.totalorder %s1248_s27, %s1244_s21 }
  0x41   : > { %v360_v16 = vmax.f32 %v359_v13, 0.0  ;;  %v1000_v25 = vld [vmem:[#allocation7 + $0x58] sm:$0xff]  ;;  %v999_v26 = vld [vmem:[#allocation7 + $0x50] sm:$0xff]  ;;  %v1104_v27 = vld [vmem:[%s1546_s3] ss:$0 sm:$0xff] }
  0x42   : > { %432 = vmatpush.bf16.msra.mxu0 %v986_v4  ;;  %v998_v33 = vld [vmem:[#allocation7 + $0x48] sm:$0xff]  ;;  %v997_v34 = vld [vmem:[#allocation7 + $0x40] sm:$0xff]  ;;  %v1012_v35 = vld [vmem:[#allocation8 + $0x78] sm:$0xff]  ;;  %p1246_p3 = pnand %p1245_p1, %p1437_p2  ;;  %p1251_p12 = por %p1250_p11, %p1249_p10 }
  0x43   : > { %515 = vmatpush.bf16.msra.mxu1 %v994_v5  ;;  %v361_v18 = vpack.c.bf16 %v360_v16, %v360_v16  ;;  %684 = vmatpush.bf16.msra.mxu3 %v1012_v35  ;;  %v1011_v36 = vld [vmem:[#allocation8 + $0x70] sm:$0xff]  ;;  %v1010_v37 = vld [vmem:[#allocation8 + $0x68] sm:$0xff]  ;;  %v1009_v38 = vld [vmem:[#allocation8 + $0x60] sm:$0xff] }
  0x44   : > { %600 = vmatpush.bf16.msra.mxu2 %v1003_v22  ;;  %v1008_v39 = vld [vmem:[#allocation8 + $0x58] sm:$0xff]  ;;  %v1007_v40 = vld [vmem:[#allocation8 + $0x50] sm:$0xff]  ;;  %v1105_v41 = vld [vmem:[%s1548_s5] ss:$0 sm:$0xff]  ;;  %p1247_p9 = pneg %p1246_p3 }
  0x45   : > { %v1006_v48 = vld [vmem:[#allocation8 + $0x48] sm:$0xff]  ;;  %v1005_v49 = vld [vmem:[#allocation8 + $0x40] sm:$0xff] }
  0x46   : > { %433 = vmatpush.bf16.msra.mxu0 %v985_v6  ;;  %v1106_v50 = vld [vmem:[%s1546_s3 + $0x1] ss:$0 sm:$0xff]  ;;  %p1252_p13 = pnand %p1251_p12, %p1247_p9 }
  0x47   : > { %516 = vmatpush.bf16.msra.mxu1 %v993_v7  ;;  %685 = vmatpush.bf16.msra.mxu3 %v1011_v36  ;;  %v1107_v56 = vld [vmem:[%s1548_s5 + $0x1] ss:$0 sm:$0xff] }
  0x48   : > { %601 = vmatpush.bf16.msra.mxu2 %v1002_v23 }
  0x4a   : > { %434 = vmatpush.bf16.msra.mxu0 %v984_v8 }
  0x4b   : > { %517 = vmatpush.bf16.msra.mxu1 %v992_v10  ;;  %686 = vmatpush.bf16.msra.mxu3 %v1010_v37 }
  0x4c   : > { %602 = vmatpush.bf16.msra.mxu2 %v1001_v24 }
  0x4e   : > { %435 = vmatpush.bf16.msra.mxu0 %v983_v11 }
  0x4f   : > { %518 = vmatpush.bf16.msra.mxu1 %v991_v14  ;;  %687 = vmatpush.bf16.msra.mxu3 %v1009_v38 }
  0x50   : > { %603 = vmatpush.bf16.msra.mxu2 %v1000_v25 }
  0x52   : > { %436 = vmatpush.bf16.msra.mxu0 %v982_v15 }
  0x53   : > { %519 = vmatpush.bf16.msra.mxu1 %v990_v19  ;;  %688 = vmatpush.bf16.msra.mxu3 %v1008_v39 }
  0x54   : > { %604 = vmatpush.bf16.msra.mxu2 %v999_v26 }
  0x56   : > { %437 = vmatpush.bf16.msra.mxu0 %v981_v17 }
  0x57   : > { %520 = vmatpush.bf16.msra.mxu1 %v989_v20  ;;  %689 = vmatpush.bf16.msra.mxu3 %v1007_v40 }
  0x58   : > { %605 = vmatpush.bf16.msra.mxu2 %v998_v33 }
  0x59   : > { %438 = vmatmul.bf16.vlgmr.msra.gmra.mxu0 %v361_v18 }
  0x5b   : > { %690 = vmatpush.bf16.msra.mxu3 %v1006_v48 }
  0x5c   : > { %606 = vmatpush.bf16.msra.mxu2 %v997_v34 }
  0x5f   : > { %691 = vmatpush.bf16.msra.mxu3 %v1005_v49 }
  0xd6   : > { %v439_v28 = vpop.f32.mrf.mxu0 }
  0xd7   : > { %v440_v29 = vadd.f32 %v1104_v27, %v439_v28 }
  0xd9   : > { %v443_v30 = vmax.f32 %v440_v29, 0.0 }
  0xdb   : > { %v444_v31 = vpack.c.bf16 %v443_v30, %v443_v30 }
  0xdd   : > { %521 = vmatmul.bf16.vlgmr.msra.gmra.mxu1 %v444_v31 }
  0xde   : > { %v441_v32 = vpop.f32.mrf.mxu0 }
 0x15a   : > { %v522_v42 = vpop.f32.mrf.mxu1 }
 0x15b   : > { %v523_v43 = vadd.f32 %v1105_v41, %v522_v42 }
 0x15d   : > { %v526_v44 = vadd.f32 %v523_v43, %v359_v13 }
 0x15f   : > { %v527_v45 = vmax.f32 %v526_v44, 0.0 }
 0x161   : > { %v528_v46 = vpack.c.bf16 %v527_v45, %v527_v45 }
 0x162   : > { %v524_v47 = vpop.f32.mrf.mxu1 }
 0x163   : > { %607 = vmatmul.bf16.vlgmr.msra.gmra.mxu2 %v528_v46 }
 0x1e6   : > { %v608_v51 = vpop.f32.mrf.mxu2 }
 0x1e7   : > { %v609_v52 = vadd.f32 %v1106_v50, %v608_v51 }
 0x1e9   : > { %v612_v53 = vmax.f32 %v609_v52, 0.0 }
 0x1eb   : > { %v613_v54 = vpack.c.bf16 %v612_v53, %v612_v53 }
 0x1ed   : > { %692 = vmatmul.bf16.vlgmr.msra.gmra.mxu3 %v613_v54 }
 0x1ee   : > { %v610_v55 = vpop.f32.mrf.mxu2 }
 0x270   : > { %v693_v57 = vpop.f32.mrf.mxu3 }
 0x271   : > { %v694_v58 = vadd.f32 %v1107_v56, %v693_v57 }
 0x273   : > { %v697_v59 = vadd.f32 %v694_v58, %v526_v44 }
 0x275   : > { %698 = vst [vmem:[%s353_s19] sm:$0xff] %v697_v59 }
 0x276   : > { %1255 = shalt.err (!%p1252_p13)
}
 0x277   : > { %1025 = dma.vmem_to_hbm [thread:$0]  (%p1437_p2), %s714_s11, 128, %s716_s12, %s700_s24  }
 0x278   : > { %v695_v60 = vpop.f32.mrf.mxu3 }
 0x279 PF: > { %s1568_s20 = sld [smem:[#allocation16_spill]]  ;;  %p1042_p0 = pnand %p839_p6, %p1444_p5 }
 0x27b   : > { %p1043_p4 = pneg %p1042_p0 }
 0x27f   : > { %s727_s8 = sand.u32 1, %s1568_s20  }
 0x280   : > { %s728_s9 = scalar_lea.sflag [#allocation4], %s727_s8 }
 0x281   : > { %1297 = dma.done.wait (%p1043_p4), %s728_s9, 128  }
 0x282   : > { %1299 = vsyncadd (%p1043_p4), %s728_s9, 4294967168  ;;  %s26_s26 = sadd.s32 1, %s1322_s26   ;;  %s1570_s10 = sld [smem:[#allocation17_spill]] }
 0x283   : > { %p23_p7 = scmp.ge.s32.totalorder %s26_s26, 4   ;;  %s1571_s23 = sld [smem:[#allocation19_spill]] }
 0x284   : > { %s1572_s30 = sld [smem:[#allocation18_spill]]  ;;  %s1573_s21 = smov %s1306_s22 }
 0x285   : > { %s1575_s24 = smov %s1318_s25 }
 0x286   :  { %25 = sbr.rel (!%p23_p7) target bundleno = 12 (0xc), region = 114 }
 0x288   : > { %s1574_s22 = smov %s1570_s10 }
 0x28a   : > { %s1576_s25 = smov %s1572_s30 }
 0x28b   :  { %734 = vsyncpa [#allocation3], 1 }
 0x28c   :  { %736 = vsyncpa [#allocation3 + $0x1], 1 }
 0x28d   :  { %737 = vsyncpa [#allocation6], 1 }
 0x28e   :  { %739 = vsyncpa [#allocation6 + $0x1], 1 }
 0x28f   :  { %740 = vsyncpa [#allocation9], 1 }
 0x290   :  { %741 = vsyncpa [#allocation4], 1 }
 0x291   :  { %743 = vsyncpa [#allocation4 + $0x1], 1 }

</bundles_post_ra>
